<compile_context>
chip_gen: v6e
topology: v6e:2x2x1
jax: 0.10.0
libtpu: 0.0.40
codegen_flags: <defaults>
</compile_context>

<pallas_src>
import jax
import jax.numpy as jnp
from jax.experimental import pallas as pl
from jax.experimental.pallas import tpu as pltpu

NEG_SLOPE = 0.01   # PyTorch nn.LeakyReLU default
LN_EPS = 1e-5      # PyTorch nn.LayerNorm default


# --------------------------------------------------------------------------- #
# Kernel
# --------------------------------------------------------------------------- #
def ffn_kernel(x_ref, w1_ref, b1_ref, w2_ref, b2_ref, gamma_ref, beta_ref,
               o_ref, acc_ref):
    h_idx = pl.program_id(1)

    # Zero the (TM, D) f32 accumulator at the start of each H sweep.
    @pl.when(h_idx == 0)
    def _():
        acc_ref[...] = jnp.zeros_like(acc_ref)

    x = x_ref[...]                                                # (TM, D), native dtype

    # ---- fc1 slice + bias + LeakyReLU (f32) --------------------------------
    h_pre = jnp.dot(x, w1_ref[...],
                    preferred_element_type=jnp.float32) + b1_ref[...]   # (TM, TH)
    h_act = jnp.maximum(h_pre, NEG_SLOPE * h_pre)                 # LeakyReLU(0.01)

    # ---- fc2 partial product, accumulated in f32 ---------------------------
    # Cast the activation back to the weight dtype so bf16 weights keep the
    # fast MXU path; accumulation stays f32.
    acc_ref[...] += jnp.dot(h_act.astype(w2_ref.dtype), w2_ref[...],
                            preferred_element_type=jnp.float32)

    # ---- finalize: bias2 + residual + LayerNorm on the last H tile ---------
    @pl.when(h_idx == pl.num_programs(1) - 1)
    def _():
        y = acc_ref[...] + b2_ref[...]                            # (TM, D) f32
        # TODO(synk): nn.Dropout(ffn_dropout) is identity in eval mode;
        # training-mode dropout would use pltpu.prng_seed + prng_random_bits.
        z = x.astype(jnp.float32) + y                             # residual
        mean = jnp.mean(z, axis=-1, keepdims=True)
        zc = z - mean
        var = jnp.mean(zc * zc, axis=-1, keepdims=True)           # biased var (PyTorch LN)
        inv = jax.lax.rsqrt(var + LN_EPS)
        o_ref[...] = (zc * inv * gamma_ref[...] + beta_ref[...]).astype(o_ref.dtype)


# --------------------------------------------------------------------------- #
# Tile / VMEM sizing helpers
# --------------------------------------------------------------------------- #
def _device_vmem_cap():
    """~82% of physical VMEM per core: ~52 MiB on v7x (64 MiB), ~105 MiB on
    v5e/v6e (128 MiB).  Never request the full physical VMEM — Mosaic needs
    headroom for internal scratch and output staging."""
    try:
        phys = int(pltpu.get_tpu_info().vmem_capacity_bytes)
    except Exception:
        phys = 64 * 1024 * 1024   # conservative fallback (v7x per-core size)
    return int(phys * 0.82)


def _vmem_estimate(tm, th, d, w_itemsize, x_itemsize):
    """Footprint of one grid step, including default double-buffering and the
    live f32 / weight-dtype intermediates the kernel body creates."""
    dbl = 2                                          # default pipeline depth
    io_tiles = dbl * 2 * tm * d * x_itemsize         # x-in + out tiles
    weights = dbl * 2 * d * th * w_itemsize          # streamed W1 (D,TH) + W2 (TH,D)
    small = dbl * (th + 3 * d) * 4                   # f32 b1 slice + b2/gamma/beta rows
    acc = tm * d * 4                                 # f32 scratch accumulator
    live = tm * th * (4 + w_itemsize) + 3 * tm * d * 4  # f32 h, cast h, z/zc/out temps
    return int(1.3 * (io_tiles + weights + small + acc + live))  # 30% headroom


def _choose_tm(m, tm_req):
    m8 = pl.cdiv(m, 8) * 8
    if m8 <= 128 or tm_req < 128:
        # Tiny problem (or explicitly tiny tile for testing): sublane-aligned.
        return max(8, min(pl.cdiv(tm_req, 8) * 8, m8))
    # Production path: MXU-aligned (multiple of 128; default request is 256).
    return max(128, (tm_req // 128) * 128)


def _choose_th(h, th_req):
    if h <= th_req or h <= 128:
        return h                                     # single full-width H tile
    return max(128, (th_req // 128) * 128)           # lane-aligned H slices


# --------------------------------------------------------------------------- #
# Wrapper
# --------------------------------------------------------------------------- #
def position_wise_feed_forward(x, w1, b1, w2, b2, gamma, beta, *, tm=256, th=512):
    """x: (batch, seq, dim_model).  Weights pre-transposed: w1 (D,H), w2 (H,D).
    For best throughput pass x/w1/w2 as bf16 (f32 takes the slow MXU path)."""
    B, S, D = x.shape
    H = w1.shape[1]
    M = B * S

    w_itemsize = jnp.dtype(w1.dtype).itemsize
    x_itemsize = jnp.dtype(x.dtype).itemsize
    cap = _device_vmem_cap()

    tm = _choose_tm(M, tm)
    th = _choose_th(H, th)
    # Auto-shrink tiles (H first, then M) if the footprint would exceed the
    # per-core VMEM budget; shrunk tiles stay multiples of 128.
    while _vmem_estimate(tm, th, D, w_itemsize, x_itemsize) > cap and th >= 256:
        th = max(128, ((th // 2) // 128) * 128)
    while _vmem_estimate(tm, th, D, w_itemsize, x_itemsize) > cap and tm >= 256:
        tm = max(128, ((tm // 2) // 128) * 128)

    Mp = pl.cdiv(M, tm) * tm
    Hp = pl.cdiv(H, th) * th

    # Pad tokens / hidden.  Padded token rows are all-zero: LayerNorm sees
    # var=0 and computes rsqrt(eps) on them — finite, and sliced off below, so
    # benign (do not remove the eps or the [:M] slice).  Padded hidden columns
    # have zero W2 rows, so they contribute nothing to the accumulator.
    x2 = x.reshape(M, D)
    if Mp != M:
        x2 = jnp.pad(x2, ((0, Mp - M), (0, 0)))
    if Hp != H:
        w1 = jnp.pad(w1, ((0, 0), (0, Hp - H)))
        b1 = jnp.pad(b1.reshape(1, H), ((0, 0), (0, Hp - H)))
        w2 = jnp.pad(w2, ((0, Hp - H), (0, 0)))

    # One-time f32 casts outside the kernel (no per-grid-step VPU converts).
    b1f = b1.reshape(1, Hp).astype(jnp.float32)
    b2f = b2.reshape(1, D).astype(jnp.float32)
    gammaf = gamma.reshape(1, D).astype(jnp.float32)
    betaf = beta.reshape(1, D).astype(jnp.float32)

    vmem_limit = min(max(_vmem_estimate(tm, th, D, w_itemsize, x_itemsize),
                         32 * 1024 * 1024), cap)

    out2 = pl.pallas_call(
        ffn_kernel,
        out_shape=jax.ShapeDtypeStruct((Mp, D), x.dtype),
        grid_spec=pltpu.PrefetchScalarGridSpec(
            num_scalar_prefetch=0,
            grid=(Mp // tm, Hp // th),            # (token tiles, hidden tiles)
            in_specs=[
                pl.BlockSpec((tm, D), lambda i, h: (i, 0)),   # x     : per-M tile (not re-DMAd across h)
                pl.BlockSpec((D, th), lambda i, h: (0, h)),   # w1    : streamed H column-slices
                pl.BlockSpec((1, th), lambda i, h: (0, h)),   # b1    : streamed H slices (f32)
                pl.BlockSpec((th, D), lambda i, h: (h, 0)),   # w2    : streamed H row-slices
                pl.BlockSpec((1, D), lambda i, h: (0, 0)),    # b2    : resident (f32)
                pl.BlockSpec((1, D), lambda i, h: (0, 0)),    # gamma : resident (f32)
                pl.BlockSpec((1, D), lambda i, h: (0, 0)),    # beta  : resident (f32)
            ],
            out_specs=pl.BlockSpec((tm, D), lambda i, h: (i, 0)),
            scratch_shapes=[pltpu.VMEM((tm, D), jnp.float32)],   # fc2 accumulator
        ),
        compiler_params=pltpu.CompilerParams(
            dimension_semantics=("parallel", "arbitrary"),   # M parallel, H reduction
            vmem_limit_bytes=int(vmem_limit),
        ),
    )(x2, w1, b1f, w2, b2f, gammaf, betaf)

    return out2[:M].reshape(B, S, D)


# --------------------------------------------------------------------------- #
# Init + reference + self-test
# --------------------------------------------------------------------------- #
def init_params(key, dim_model, hidden, dtype=jnp.float32):
    """Deterministic init mimicking nn.Linear defaults (uniform +-1/sqrt(fan_in))."""
    k1, k2, k3, k4 = jax.random.split(key, 4)
    lim1 = 1.0 / (dim_model ** 0.5)
    lim2 = 1.0 / (hidden ** 0.5)
    w1 = jax.random.uniform(k1, (dim_model, hidden), dtype, -lim1, lim1)   # (D,H) = W1^T
    b1 = jax.random.uniform(k2, (1, hidden), dtype, -lim1, lim1)
    w2 = jax.random.uniform(k3, (hidden, dim_model), dtype, -lim2, lim2)   # (H,D) = W2^T
    b2 = jax.random.uniform(k4, (1, dim_model), dtype, -lim2, lim2)
    gamma = jnp.ones((1, dim_model), dtype)
    beta = jnp.zeros((1, dim_model), dtype)
    return w1, b1, w2, b2, gamma, beta


def reference(x, w1, b1, w2, b2, gamma, beta):
    hp = jnp.dot(x, w1, precision=jax.lax.Precision.HIGHEST) + b1
    h = jnp.where(hp >= 0, hp, NEG_SLOPE * hp)
    y = jnp.dot(h, w2, precision=jax.lax.Precision.HIGHEST) + b2
    z = x + y
    mean = jnp.mean(z, axis=-1, keepdims=True)
    var = jnp.mean((z - mean) ** 2, axis=-1, keepdims=True)
    return (z - mean) / jnp.sqrt(var + LN_EPS) * gamma + beta


if __name__ == "__main__":
    batch, seq, dim_model, hidden = 2, 8, 32, 256

    key = jax.random.PRNGKey(0)
    kx, kp = jax.random.split(key)
    x = jax.random.normal(kx, (batch, seq, dim_model), jnp.float32)
    w1, b1, w2, b2, gamma, beta = init_params(kp, dim_model, hidden)

    # tm=8, th=128 so the tiny test shape exercises a real 2-D grid:
    # (M=16 -> 2 token tiles) x (H=256 -> 2 hidden tiles with accumulation).
    out = position_wise_feed_forward(x, w1, b1, w2, b2, gamma, beta, tm=8, th=128)
    out = jax.block_until_ready(out)

    ref = reference(x, w1, b1, w2, b2, gamma, beta)
    assert out.shape == (batch, seq, dim_model)
    assert jnp.allclose(out, ref, atol=1e-4, rtol=1e-4), "mismatch vs reference"

    print("KERNEL_OK")
</pallas_src>

<mosaic_0001>
module attributes {stable_mosaic.version = 11 : i64} {
  func.func @ffn_kernel(%arg0: i32, %arg1: i32, %arg2: memref<8x32xf32, #tpu.memory_space<vmem>>, %arg3: memref<32x128xf32, #tpu.memory_space<vmem>>, %arg4: memref<1x128xf32, #tpu.memory_space<vmem>>, %arg5: memref<128x32xf32, #tpu.memory_space<vmem>>, %arg6: memref<1x32xf32, #tpu.memory_space<vmem>>, %arg7: memref<1x32xf32, #tpu.memory_space<vmem>>, %arg8: memref<1x32xf32, #tpu.memory_space<vmem>>, %arg9: memref<8x32xf32, #tpu.memory_space<vmem>>, %arg10: memref<8x32xf32, #tpu.memory_space<vmem>>) attributes {dimension_semantics = [#tpu.dimension_semantics<parallel>, #tpu.dimension_semantics<arbitrary>], iteration_bounds = array<i64: 2, 2>, scalar_prefetch = 0 : i64, scratch_operands = 1 : i64, tpu.core_type = #tpu.core_type<tc>, window_params = [{transform_indices = @transform_0, window_bounds = array<i64: 8, 32>}, {transform_indices = @transform_1, window_bounds = array<i64: 32, 128>}, {transform_indices = @transform_2, window_bounds = array<i64: 1, 128>}, {transform_indices = @transform_3, window_bounds = array<i64: 128, 32>}, {pipeline_mode = #tpu.pipeline_mode<synchronous>, transform_indices = @transform_4, window_bounds = array<i64: 1, 32>}, {pipeline_mode = #tpu.pipeline_mode<synchronous>, transform_indices = @transform_5, window_bounds = array<i64: 1, 32>}, {pipeline_mode = #tpu.pipeline_mode<synchronous>, transform_indices = @transform_6, window_bounds = array<i64: 1, 32>}, {transform_indices = @transform_7, window_bounds = array<i64: 8, 32>}]} {
    %c0_i32 = arith.constant 0 : i32
    %0 = arith.cmpi eq, %arg1, %c0_i32 : i32
    %1 = arith.extui %0 : i1 to i32
    %c0_i32_0 = arith.constant 0 : i32
    %2 = arith.cmpi ne, %1, %c0_i32_0 : i32
    scf.if %2 {
      %cst_15 = arith.constant 0.000000e+00 : f32
      %20 = vector.broadcast %cst_15 : f32 to vector<8x32xf32>
      %c0_16 = arith.constant 0 : index
      %c0_17 = arith.constant 0 : index
      %21 = vector.load %arg10[%c0_16, %c0_17] : memref<8x32xf32, #tpu.memory_space<vmem>>, vector<8x32xf32>
      tpu.vector_store %arg10[%c0_16, %c0_17], %20 {strides = array<i32>} : memref<8x32xf32, #tpu.memory_space<vmem>>, vector<8x32xf32>,
    } else {
    }
    %c0 = arith.constant 0 : index
    %c0_1 = arith.constant 0 : index
    %3 = vector.load %arg2[%c0, %c0_1] : memref<8x32xf32, #tpu.memory_space<vmem>>, vector<8x32xf32>
    %c0_2 = arith.constant 0 : index
    %c0_3 = arith.constant 0 : index
    %4 = vector.load %arg3[%c0_2, %c0_3] : memref<32x128xf32, #tpu.memory_space<vmem>>, vector<32x128xf32>
    %cst = arith.constant dense<0.000000e+00> : vector<8x128xf32>
    %5 = tpu.matmul %3, %4, %cst {dimension_numbers = #tpu.dot_dimension_numbers<[1], [0], [0], [1], [0, 0, 1, 1], [], []>} : vector<8x32xf32>, vector<32x128xf32>, vector<8x128xf32> -> vector<8x128xf32>
    %c0_4 = arith.constant 0 : index
    %c0_5 = arith.constant 0 : index
    %6 = vector.load %arg4[%c0_4, %c0_5] : memref<1x128xf32, #tpu.memory_space<vmem>>, vector<1x128xf32>
    %7 = vector.broadcast %6 : vector<1x128xf32> to vector<8x128xf32>
    %8 = arith.addf %5, %7 : vector<8x128xf32>
    %cst_6 = arith.constant 0.00999999977 : f32
    %9 = vector.broadcast %cst_6 : f32 to vector<8x128xf32>
    %10 = arith.mulf %9, %8 : vector<8x128xf32>
    %11 = arith.maximumf %8, %10 : vector<8x128xf32>
    %c0_7 = arith.constant 0 : index
    %c0_8 = arith.constant 0 : index
    %12 = vector.load %arg10[%c0_7, %c0_8] : memref<8x32xf32, #tpu.memory_space<vmem>>, vector<8x32xf32>
    %c0_9 = arith.constant 0 : index
    %c0_10 = arith.constant 0 : index
    %13 = vector.load %arg5[%c0_9, %c0_10] : memref<128x32xf32, #tpu.memory_space<vmem>>, vector<128x32xf32>
    %cst_11 = arith.constant dense<0.000000e+00> : vector<8x32xf32>
    %14 = tpu.matmul %11, %13, %cst_11 {dimension_numbers = #tpu.dot_dimension_numbers<[1], [0], [0], [1], [0, 0, 1, 1], [], []>} : vector<8x128xf32>, vector<128x32xf32>, vector<8x32xf32> -> vector<8x32xf32>
    %15 = arith.addf %12, %14 : vector<8x32xf32>
    %c0_12 = arith.constant 0 : index
    %c0_13 = arith.constant 0 : index
    %16 = vector.load %arg10[%c0_12, %c0_13] : memref<8x32xf32, #tpu.memory_space<vmem>>, vector<8x32xf32>
    tpu.vector_store %arg10[%c0_12, %c0_13], %15 {strides = array<i32>} : memref<8x32xf32, #tpu.memory_space<vmem>>, vector<8x32xf32>,
    %c1_i32 = arith.constant 1 : i32
    %17 = arith.cmpi eq, %arg1, %c1_i32 : i32
    %18 = arith.extui %17 : i1 to i32
    %c0_i32_14 = arith.constant 0 : i32
    %19 = arith.cmpi ne, %18, %c0_i32_14 : i32
    scf.if %19 {
      %c0_15 = arith.constant 0 : index
      %c0_16 = arith.constant 0 : index
      %20 = vector.load %arg10[%c0_15, %c0_16] : memref<8x32xf32, #tpu.memory_space<vmem>>, vector<8x32xf32>
      %c0_17 = arith.constant 0 : index
      %c0_18 = arith.constant 0 : index
      %21 = vector.load %arg6[%c0_17, %c0_18] : memref<1x32xf32, #tpu.memory_space<vmem>>, vector<1x32xf32>
      %22 = vector.broadcast %21 : vector<1x32xf32> to vector<8x32xf32>
      %23 = arith.addf %20, %22 : vector<8x32xf32>
      %24 = arith.addf %3, %23 : vector<8x32xf32>
      %cst_19 = arith.constant dense<0.000000e+00> : vector<8xf32>
      %25 = vector.multi_reduction <add>, %24, %cst_19 [1] : vector<8x32xf32> to vector<8xf32>
      %26 = vector.shape_cast %25 : vector<8xf32> to vector<8x1xf32>
      %cst_20 = arith.constant 3.200000e+01 : f32
      %27 = vector.broadcast %cst_20 : f32 to vector<8x1xf32>
      %28 = arith.divf %26, %27 : vector<8x1xf32>
      %29 = vector.broadcast %28 : vector<8x1xf32> to vector<8x32xf32>
      %30 = arith.subf %24, %29 : vector<8x32xf32>
      %31 = arith.mulf %30, %30 : vector<8x32xf32>
      %cst_21 = arith.constant dense<0.000000e+00> : vector<8xf32>
      %32 = vector.multi_reduction <add>, %31, %cst_21 [1] : vector<8x32xf32> to vector<8xf32>
      %33 = vector.shape_cast %32 : vector<8xf32> to vector<8x1xf32>
      %cst_22 = arith.constant 3.200000e+01 : f32
      %34 = vector.broadcast %cst_22 : f32 to vector<8x1xf32>
      %35 = arith.divf %33, %34 : vector<8x1xf32>
      %cst_23 = arith.constant 9.99999974E-6 : f32
      %36 = vector.broadcast %cst_23 : f32 to vector<8x1xf32>
      %37 = arith.addf %35, %36 : vector<8x1xf32>
      %38 = math.rsqrt %37 : vector<8x1xf32>
      %39 = vector.broadcast %38 : vector<8x1xf32> to vector<8x32xf32>
      %40 = arith.mulf %30, %39 : vector<8x32xf32>
      %c0_24 = arith.constant 0 : index
      %c0_25 = arith.constant 0 : index
      %41 = vector.load %arg7[%c0_24, %c0_25] : memref<1x32xf32, #tpu.memory_space<vmem>>, vector<1x32xf32>
      %42 = vector.broadcast %41 : vector<1x32xf32> to vector<8x32xf32>
      %43 = arith.mulf %40, %42 : vector<8x32xf32>
      %c0_26 = arith.constant 0 : index
      %c0_27 = arith.constant 0 : index
      %44 = vector.load %arg8[%c0_26, %c0_27] : memref<1x32xf32, #tpu.memory_space<vmem>>, vector<1x32xf32>
      %45 = vector.broadcast %44 : vector<1x32xf32> to vector<8x32xf32>
      %46 = arith.addf %43, %45 : vector<8x32xf32>
      %c0_28 = arith.constant 0 : index
      %c0_29 = arith.constant 0 : index
      %47 = vector.load %arg9[%c0_28, %c0_29] : memref<8x32xf32, #tpu.memory_space<vmem>>, vector<8x32xf32>
      tpu.vector_store %arg9[%c0_28, %c0_29], %46 {strides = array<i32>} : memref<8x32xf32, #tpu.memory_space<vmem>>, vector<8x32xf32>,
    } else {
    }
    return
  }
  func.func @transform_0(%arg0: i32, %arg1: i32) -> (i32, i32) {
    %c0_i32 = arith.constant 0 : i32
    %c0_i32_0 = arith.constant 0 : i32
    return %arg0, %c0_i32 : i32, i32
  }
  func.func @transform_1(%arg0: i32, %arg1: i32) -> (i32, i32) {
    %c0_i32 = arith.constant 0 : i32
    %c0_i32_0 = arith.constant 0 : i32
    return %c0_i32, %arg1 : i32, i32
  }
  func.func @transform_2(%arg0: i32, %arg1: i32) -> (i32, i32) {
    %c0_i32 = arith.constant 0 : i32
    %c0_i32_0 = arith.constant 0 : i32
    return %c0_i32, %arg1 : i32, i32
  }
  func.func @transform_3(%arg0: i32, %arg1: i32) -> (i32, i32) {
    %c0_i32 = arith.constant 0 : i32
    %c0_i32_0 = arith.constant 0 : i32
    return %arg1, %c0_i32 : i32, i32
  }
  func.func @transform_4(%arg0: i32, %arg1: i32) -> (i32, i32) {
    %c0_i32 = arith.constant 0 : i32
    %c0_i32_0 = arith.constant 0 : i32
    %c0_i32_1 = arith.constant 0 : i32
    return %c0_i32, %c0_i32_0 : i32, i32
  }
  func.func @transform_5(%arg0: i32, %arg1: i32) -> (i32, i32) {
    %c0_i32 = arith.constant 0 : i32
    %c0_i32_0 = arith.constant 0 : i32
    %c0_i32_1 = arith.constant 0 : i32
    return %c0_i32, %c0_i32_0 : i32, i32
  }
  func.func @transform_6(%arg0: i32, %arg1: i32) -> (i32, i32) {
    %c0_i32 = arith.constant 0 : i32
    %c0_i32_0 = arith.constant 0 : i32
    %c0_i32_1 = arith.constant 0 : i32
    return %c0_i32, %c0_i32_0 : i32, i32
  }
  func.func @transform_7(%arg0: i32, %arg1: i32) -> (i32, i32) {
    %c0_i32 = arith.constant 0 : i32
    %c0_i32_0 = arith.constant 0 : i32
    return %arg0, %c0_i32 : i32, i32
  }
}

</mosaic_0001>

<bundles_post_ra>
// kernel: tpu_custom_call.1
= control target key start
LH: loop header
LB: loop body
LE: loop exit
PB: predicated region body
PF: predicated region fallthrough
CT: control target
= control target key end

     0   :  { %s1305_s0 = inlined_call_operand.vmem [shape: f32[16,32], index: 0, kind: input, shape index: {}]   ;;  %s1306_s1 = inlined_call_operand.vmem [shape: f32[32,256], index: 1, kind: input, shape index: {}]   ;;  %s1307_s2 = inlined_call_operand.vmem [shape: f32[1,256], index: 2, kind: input, shape index: {}]   ;;  %s1308_s3 = inlined_call_operand.vmem [shape: f32[256,32], index: 3, kind: input, shape index: {}]   ;;  %s1309_s4 = inlined_call_operand.vmem [shape: f32[1,32], index: 4, kind: input, shape index: {}]   ;;  %s1310_s5 = inlined_call_operand.vmem [shape: f32[1,32], index: 5, kind: input, shape index: {}]   ;;  %s1311_s6 = inlined_call_operand.vmem [shape: f32[1,32], index: 6, kind: input, shape index: {}]   ;;  %s1312_s7 = inlined_call_operand.hbm [shape: f32[16,32], index: 7, kind: output, shape index: {}]  }
   0x1   :  { %1321 = sst [smem:[#allocation16_spill]] %s1306_s1 }
   0x2   :  { %12 = vsyncpa [#allocation5], 0 }
   0x3   :  { %14 = vsyncpa [#allocation5 + $0x1], 0  ;;  %s1077_s24 = smov 0   ;;  %s1079_s25 = smov 0  }
   0x4   :  { %s1081_s26 = smov 0   ;;  %s1083_s27 = smov 0  }
   0x5   :  { %s1085_s28 = smov 0   ;;  %s1087_s29 = smov 0  }
   0x6   :  { %s1089_s30 = smov 0   ;;  %s1091_s8 = smov 0  }
   0x7   :  { %s1093_s9 = smov 0   ;;  %s1095_s10 = smov 0  }
   0x8 LB: > { %1322 = sst [smem:[#allocation7_spill]] %s1003_s26  ;;  %s740_s11 = sadd.s32 4294967295, %s1031_s10   ;;  %s1031_s10 = sphi %s1095_s10, %s20_s10   ;;  %s1027_s9 = sphi %s1093_s9, %s1344_s9   ;;  %s1023_s8 = sphi %s1091_s8, %s1343_s8   ;;  %s1019_s30 = sphi %s1089_s30, %s1342_s30   ;;  %s1015_s29 = sphi %s1087_s29, %s1341_s29   ;;  %s1011_s28 = sphi %s1085_s28, %s1340_s28   ;;  %s1007_s27 = sphi %s1083_s27, %s1339_s27   ;;  %s1003_s26 = sphi %s1081_s26, %s1338_s26   ;;  %s999_s25 = sphi %s1079_s25, %s1346_s25   ;;  %s995_s24 = sphi %s1077_s24, %s1345_s24  }
   0x9   : > { %1323 = sst [smem:[#allocation8_spill]] %s1011_s28  ;;  %s741_s12 = sadd.s32 4294967294, %s1031_s10  }
   0xa   : > { %1324 = sst [smem:[#allocation9_spill]] %s1023_s8  ;;  %s29_s13 = sadd.s32 1, %s1023_s8 }
   0xb   : > { %1325 = sst [smem:[#allocation10_spill]] %s1027_s9  ;;  %s32_s14 = sadd.s32 1, %s1027_s9 }
   0xc   : > { %p30_p0 = scmp.ge.s32.totalorder %s29_s13, 2  ;;  %s65_s15 = sadd.s32 1, %s1011_s28 }
   0xd   : > { %p72_p1 = scmp.ne.s32.totalorder %s1011_s28, %s1007_s27  ;;  %p73_p2 = scmp.eq.s32.totalorder %s1031_s10, 0 }
   0xe   : > { %s1348_s13 = smov (%p30_p0, %s29_s13), 0  ;;  %s1350_s14 = smov (!%p30_p0, %s32_s14), %s1027_s9 }
   0xf   : > { %1326 = sst [smem:[#allocation11_spill]] %s1348_s13  ;;  %s62_s16 = ssub.s32 %s1023_s8, %s1348_s13 }
  0x10   : > { %p1140_p3 = por %p73_p2, %p72_p1  ;;  %p34_p4 = scmp.ge.s32.totalorder %s1350_s14, 2 }
  0x11   : > { %p63_p5 = scmp.eq.s32.totalorder %s62_s16, 0  ;;  %s206_s18 = sadd.s32 1, %s1003_s26 }
  0x12   : > { %p216_p6 = scmp.ne.s32.totalorder %s1003_s26, %s999_s25  ;;  %s1352_s14 = smov (%p34_p4, %s1350_s14), 0 }
  0x13   : > { %1328 = sst [smem:[#allocation12_spill]] %s1352_s14  ;;  %s203_s20 = ssub.s32 %s1027_s9, %s1352_s14 }
  0x14   : > { %s1150_s19 = scalar_select %p63_p5, %s1011_s28, %s65_s15  }
  0x15   : > { %p217_p7 = scmp.eq.s32.totalorder %s740_s11, 3  ;;  %p204_p8 = scmp.eq.s32.totalorder %s203_s20, 0 }
  0x16   : > { %1329 = sst [smem:[#allocation13_spill]] %s1150_s19  ;;  %p222_p9 = scmp.ne.s32.totalorder %s999_s25, %s995_s24 }
  0x17   : > { %p1156_p10 = por %p217_p7, %p216_p6  ;;  %p223_p11 = scmp.eq.s32.totalorder %s741_s12, 3 }
  0x18   : > { %s1161_s22 = scalar_select %p204_p8, %s1003_s26, %s206_s18  }
  0x19   : > { %p1163_p12 = por %p223_p11, %p222_p9  ;;  %p743_p13 = scmp.ge.s32.totalorder %s1031_s10, 4 }
  0x1a   : > { %1331 = sst [smem:[#allocation14_spill]] %s1161_s22 }
  0x1b   : > { %s1332_s23 = scalar_select %p1163_p12, 1, 0 }
  0x1c   : > { %248 = sbr.rel (%p743_p13) target bundleno = 45 (0x2d), region = 28 }
  0x1d   : > { %1333 = sst [smem:[#allocation15_spill]] %s1332_s23 }
  0x21   : > { %258 = sbr.rel (!%p1140_p3) target bundleno = 45 (0x2d), region = 36  ;;  %s260_s11 = sand.u32 (%p1140_p3), 1, %s1011_s28  }
  0x22   : > { %s745_s15 = sshll.u32 (%p1140_p3), %s1023_s8, 3  ;;  %s744_s16 = sshll.u32 (%p1140_p3), %s260_s11, 5 }
  0x23   : > { %s1334_s1 = sld [smem:[#allocation16_spill]] (%p1140_p3)  ;;  %s262_s18 = scalar_lea.vmem (%p1140_p3), [#allocation3], %s744_s16 }
  0x29   : > { %s264_s12 = scalar_lea.vmem %s1334_s1, %s745_s15 }
  0x2a   : > { %v299_v0 = vld [vmem:[%s264_s12] sm:$0xff]  ;;  %v301_v1 = vld [vmem:[%s264_s12 + $0x10] sm:$0xff] }
  0x2b   : > { %v303_v2 = vld [vmem:[%s264_s12 + $0x20] sm:$0xff]  ;;  %300 = vst [vmem:[%s262_s18] sm:$0xff] %v299_v0  ;;  %302 = vst [vmem:[%s262_s18 + $0x8] sm:$0xff] %v301_v1  ;;  %v305_v3 = vld [vmem:[%s264_s12 + $0x30] sm:$0xff] }
  0x2c   : > { %304 = vst [vmem:[%s262_s18 + $0x10] sm:$0xff] %v303_v2  ;;  %306 = vst [vmem:[%s262_s18 + $0x18] sm:$0xff] %v305_v3 }
  0x2d PF: > { %p746_p0 = scmp.ge.s32.totalorder %s1031_s10, 1  ;;  %p326_p1 = scmp.lt.s32.totalorder %s1031_s10, 5 }
  0x2f   : > { %p327_p2 = pnand %p746_p0, %p326_p1 }
  0x30   : > { %s333_s14 = sand.u32 (!%p327_p2), 1, %s1007_s27   ;;  %s1316_s17 = sand.u32 (!%p327_p2), 1, %s999_s25  }
  0x31   : > { %330 = sbr.rel (%p327_p2) target bundleno = 813 (0x32d), region = 82  ;;  %s747_s11 = sshll.u32 (!%p327_p2), %s333_s14, 5 }
  0x32   : > { %s1181_s15 = sshll.u32 (!%p327_p2), %s1316_s17, 3  ;;  %p376_p3 = scmp.lt.s32.totalorder (!%p327_p2), %s1019_s30, 1 }
  0x33   : > { %p380_p4 = scmp.lt.s32.totalorder (!%p327_p2), %s1015_s29, 1  ;;  %s750_s16 = sshll.u32 (!%p327_p2), %s1015_s29, 4 }
  0x34   : > { %p384_p5 = scmp.lt.s32.totalorder (!%p327_p2), %s750_s16, 31  ;;  %s335_s26 = scalar_lea.vmem (!%p327_p2), [#allocation3], %s747_s11 }
  0x35   : > { %s375_s23 = scalar_lea.vmem (!%p327_p2), [#allocation4], %s1181_s15  ;;  %p752_p6 = scmp.ne.s32.totalorder (!%p327_p2), %s1015_s29, 0 }
  0x36   : > { %s377_s20 = scalar_select %p376_p3, %s1019_s30, 1 }
  0x37   : > { %s1188_s12 = scalar_select %p380_p4, %s1015_s29, 1 }
  0x38   : > { %s749_s18 = sshll.u32 %s377_s20, 3  ;;  %s1354_s16 = smov (!%p384_p5, %s750_s16), 31 }
  0x39   : > { %s1193_s9 = scalar_lea.vmem %s1305_s0, %s749_s18  ;;  %s382_s17 = scalar_lea.vmem %s1307_s2, %s1188_s12 }
  0x3a   : > { %s751_s8 = sshll.u32 %s1354_s16, 3  ;;  %392 = sbr.rel (%p752_p6) target bundleno = 65 (0x41), region = 90 }
  0x3b   : > { %s1202_s22 = scalar_lea.vmem %s1308_s3, %s751_s8 }
  0x3f   : > { %vm393_vm0 = vcmask 261120   ;;  %v1033_v4 = vmov 0.0  }
  0x40   : > { %394 = vst.msk [vmem:[#allocation2] sm:$0xff] %vm393_vm0, %v1033_v4 }
  0x41 PF: > { %v399_v5 = vld [vmem:[%s335_s26 + $0x18] sm:$0xff]  ;;  %v1034_v6 = vmov 0.0   ;;  %v398_v7 = vld [vmem:[%s335_s26 + $0x10] sm:$0xff]  ;;  %vm1035_vm1 = vmmov 0   ;;  %v498_v9 = vld [vmem:[%s1202_s22 + $0x70] sm:$0xff]  ;;  %vm407_vm2 = vcmask 261120  }
  0x42   : > { %785 = vmatprep.subr.mxu0 %v1034_v6  ;;  %793 = vmatprep.mubr.msk.f32.mxu0 %vm1035_vm1, %v1034_v6  ;;  %v499_v8 = vld [vmem:[%s1202_s22 + $0x78] sm:$0xff]  ;;  %v397_v10 = vld [vmem:[%s335_s26 + $0x8] sm:$0xff]  ;;  %v497_v11 = vld [vmem:[%s1202_s22 + $0x68] sm:$0xff]  ;;  %p755_p7 = scmp.ne.s32.totalorder %s1015_s29, 1 }
  0x43   : > { %786 = vmatpush3.msra.mxu0 %v399_v5  ;;  %796 = vmatprep.subr.mxu1 %v1034_v6  ;;  %v396_v12 = vld [vmem:[%s335_s26] sm:$0xff]  ;;  %v1211_v13 = vld [vmem:[%s1193_s9] sm:$0xff]  ;;  %v495_v15 = vld [vmem:[%s1202_s22 + $0x58] sm:$0xff] }
  0x44   : > { %787 = vmatprep.subr.mxu0 %v1034_v6  ;;  %797 = vmatpush3.msra.mxu1 %v499_v8  ;;  %v496_v14 = vld [vmem:[%s1202_s22 + $0x60] sm:$0xff]  ;;  %v494_v16 = vld [vmem:[%s1202_s22 + $0x50] sm:$0xff]  ;;  %v493_v17 = vld [vmem:[%s1202_s22 + $0x48] sm:$0xff] }
  0x45   : > { %788 = vmatpush3.msra.mxu0 %v398_v7  ;;  %798 = vmatprep.subr.mxu1 %v1034_v6  ;;  %v492_v18 = vld [vmem:[%s1202_s22 + $0x40] sm:$0xff]  ;;  %v491_v19 = vld [vmem:[%s1202_s22 + $0x38] sm:$0xff]  ;;  %v490_v20 = vld [vmem:[%s1202_s22 + $0x30] sm:$0xff] }
  0x46   : > { %789 = vmatprep.subr.mxu0 %v1034_v6  ;;  %799 = vmatpush3.msra.mxu1 %v498_v9  ;;  %v489_v21 = vld [vmem:[%s1202_s22 + $0x28] sm:$0xff]  ;;  %v488_v22 = vld [vmem:[%s1202_s22 + $0x20] sm:$0xff]  ;;  %v487_v23 = vld [vmem:[%s1202_s22 + $0x18] sm:$0xff] }
  0x47   : > { %790 = vmatpush3.msra.mxu0 %v397_v10  ;;  %800 = vmatprep.subr.mxu1 %v1034_v6  ;;  %v486_v24 = vld [vmem:[%s1202_s22 + $0x10] sm:$0xff]  ;;  %v485_v25 = vld [vmem:[%s1202_s22 + $0x8] sm:$0xff]  ;;  %v484_v26 = vld [vmem:[%s1202_s22] sm:$0xff] }
  0x48   : > { %791 = vmatprep.subr.mxu0 %v1034_v6  ;;  %801 = vmatpush3.msra.mxu1 %v497_v11  ;;  %v753_v27 = vld [vmem:[%s382_s17] ss:$0 sm:$0xff] }
  0x49   : > { %792 = vmatpush3.msra.mxu0 %v396_v12  ;;  %802 = vmatprep.subr.mxu1 %v1034_v6  ;;  %v483_v33 = vld [vmem:[#allocation2] sm:$0xff] }
  0x4a   : > { %794 = vmatmul.mubr.msk.f32.vlgmr.msra.gmra.mxu0 %vm407_vm2, %v1211_v13  ;;  %803 = vmatpush3.msra.mxu1 %v496_v14 }
  0x4b   : > { %804 = vmatprep.subr.mxu1 %v1034_v6  ;;  %828 = vmatprep.mubr.msk.f32.mxu1 %vm1035_vm1, %v1034_v6 }
  0x4c   : > { %805 = vmatpush3.msra.mxu1 %v495_v15 }
  0x4d   : > { %806 = vmatprep.subr.mxu1 %v1034_v6 }
  0x4e   : > { %807 = vmatpush3.msra.mxu1 %v494_v16 }
  0x4f   : > { %808 = vmatprep.subr.mxu1 %v1034_v6 }
  0x50   : > { %809 = vmatpush3.msra.mxu1 %v493_v17 }
  0x51   : > { %810 = vmatprep.subr.mxu1 %v1034_v6 }
  0x52   : > { %811 = vmatpush3.msra.mxu1 %v492_v18 }
  0x53   : > { %812 = vmatprep.subr.mxu1 %v1034_v6 }
  0x54   : > { %813 = vmatpush3.msra.mxu1 %v491_v19 }
  0x55   : > { %814 = vmatprep.subr.mxu1 %v1034_v6 }
  0x56   : > { %815 = vmatpush3.msra.mxu1 %v490_v20 }
  0x57   : > { %816 = vmatprep.subr.mxu1 %v1034_v6 }
  0x58   : > { %817 = vmatpush3.msra.mxu1 %v489_v21 }
  0x59   : > { %818 = vmatprep.subr.mxu1 %v1034_v6 }
  0x5a   : > { %819 = vmatpush3.msra.mxu1 %v488_v22 }
  0x5b   : > { %820 = vmatprep.subr.mxu1 %v1034_v6 }
  0x5c   : > { %821 = vmatpush3.msra.mxu1 %v487_v23 }
  0x5d   : > { %822 = vmatprep.subr.mxu1 %v1034_v6 }
  0x5e   : > { %823 = vmatpush3.msra.mxu1 %v486_v24 }
  0x5f   : > { %824 = vmatprep.subr.mxu1 %v1034_v6 }
  0x60   : > { %825 = vmatpush3.msra.mxu1 %v485_v25 }
  0x61   : > { %826 = vmatprep.subr.mxu1 %v1034_v6 }
  0x62   : > { %827 = vmatpush3.msra.mxu1 %v484_v26 }
 0x10a   : > { %v477_v28 = vpop.f32.mrf.mxu0 }
 0x10b   : > { %v478_v29 = vadd.f32 %v753_v27, %v477_v28 }
 0x10c   : > { %v795_v30 = vpop.f32.mrf.mxu0 }
 0x10d   : > { %v481_v31 = vmul.f32 0.01, %v478_v29 }
 0x10f   : > { %v482_v32 = vmax.f32 %v478_v29, %v481_v31 }
 0x111   : > { %829 = vmatmul.mubr.f32.vlgmr.msra.gmra.mxu1 %v482_v32 }
 0x1d0   : > { %575 = sbr.rel (%p755_p7) target bundleno = 789 (0x315), region = 94 }
 0x1d1   : > { %v566_v34 = vpop.f32.mrf.mxu1 }
 0x1d2   : > { %v570_v35 = vadd.f32 %v566_v34, %v483_v33 }
 0x1d3   : > { %v830_v36 = vpop.f32.mrf.mxu1 }
 0x1d4   : > { %571 = vst.msk [vmem:[#allocation2] sm:$0xff] %vm407_vm2, %v570_v35 }
 0x1d5   : > { %v756_v38 = vld [vmem:[%s1309_s4] ss:$0 sm:$0xff] }
 0x1d6   : > { %v757_v51 = vld [vmem:[%s1310_s5] ss:$0 sm:$0xff] }
 0x1d7   : > { %v758_v53 = vld [vmem:[%s1311_s6] ss:$0 sm:$0xff] }
 0x1db   : > { %v576_v37 = vld [vmem:[#allocation2] sm:$0xff] }
 0x1dc   : > { %v584_v39 = vadd.f32 %v756_v38, %v576_v37 }
 0x1de   : > { %v585_v40 = vadd.f32 %v584_v39, %v1211_v13 }
 0x1e0   : > { %v586_v41 = vsel %vm407_vm2, %v585_v40, 0.0 }
 0x1e1   : > { %587 = vadd.xlane.f32.xlu0 %v586_v41 }
 0x26a   : > { %v588_v42 = vpop.xlane.xlu0 %587 }
 0x26b   : > { %v590_v43 = vmul.f32 0.03125, %v588_v42 }
 0x26d   : > { %v591_v44 = vsub.f32 %v585_v40, %v590_v43 }
 0x26f   : > { %v592_v45 = vmul.f32 %v591_v44, %v591_v44 }
 0x271   : > { %v593_v46 = vsel %vm407_vm2, %v592_v45, 0.0 }
 0x272   : > { %594 = vadd.xlane.f32.xlu0 %v593_v46 }
 0x2fb   : > { %v595_v47 = vpop.xlane.xlu0 %594 }
 0x2fc   : > { %v596_v48 = vmul.f32 0.03125, %v595_v47 }
 0x2fe   : > { %v597_v49 = vadd.f32 1e-05, %v596_v48 }
 0x300   : > { %921 = vrsqrt.f32 %v597_v49 }
 0x30d   : > { %v922_v50 = vpop.eup %921 }
 0x30e   : > { %v599_v52 = vmul.f32 %v922_v50, %v591_v44 }
 0x310   : > { %v607_v54 = vmul.f32 %v757_v51, %v599_v52 }
 0x312   : > { %v615_v55 = vadd.f32 %v758_v53, %v607_v54 }
 0x314   : > { %616 = vst.msk [vmem:[%s375_s23] sm:$0xff] %vm407_vm2, %v615_v55 }
 0x315 PF: > { %s760_s22 = sshll.u32 %s1019_s30, 7  ;;  %s631_s20 = sshll.u32 %s375_s23, 4  ;;  %s632_s20 = int_to_ptr.vmem [resolvable:$true] %s631_s20 }
 0x316   : > { %s629_s16 = scalar_lea.hbm %s1312_s7, %s760_s22  ;;  %s1335_s12 = sand.u32 1, %s999_s25  }
 0x317   : > { %s618_s18 = scalar_lea.sflag [#allocation5], %s1335_s12  ;;  %s923_s27 = scalar_lea.vmem %s632_s20, 128 }
 0x318   : > { %p924_p8 = scmp.ne.s32.totalorder %s632_s20, %s923_s27  ;;  %s1036_s14 = smov [#allocation4]  }
 0x319   : > { %s927_s1 = sshll.u32 %s1036_s14, 4  ;;  %s928_s1 = int_to_ptr.vmem [resolvable:$false] %s927_s1 }
 0x31a   : > { %p925_p9 = pnand %p924_p8, %p1156_p10  ;;  %s929_s26 = scalar_lea.vmem %s928_s1, 256 }
 0x31b   : > { %p930_p13 = scmp.lt.s32.totalorder %s632_s20, %s928_s1  ;;  %p931_p0 = scmp.lt.s32.totalorder %s929_s26, %s923_s27 }
 0x31c   : > { %p926_p11 = pneg %p925_p9 }
 0x31d   : > { %p932_p1 = por %p931_p0, %p930_p13 }
 0x31f   : > { %p933_p2 = pnand %p932_p1, %p926_p11 }
 0x321   : > { %936 = shalt.err (!%p933_p2)
}
 0x322   : > { %s937_s30 = scalar_lea.hbm %s629_s16, 128  ;;  %s941_s28 = scalar_lea.hbm %s1312_s7, 256 }
 0x323   : > { %p938_p3 = scmp.ne.s32.totalorder %s629_s16, %s937_s30  ;;  %p942_p6 = scmp.lt.s32.totalorder %s629_s16, %s1312_s7 }
 0x324   : > { %p943_p7 = scmp.lt.s32.totalorder %s941_s28, %s937_s30 }
 0x325   : > { %p939_p4 = pnand %p938_p3, %p1156_p10 }
 0x326   : > { %p944_p8 = por %p943_p7, %p942_p6 }
 0x327   : > { %p940_p5 = pneg %p939_p4 }
 0x329   : > { %p945_p9 = pnand %p944_p8, %p940_p5 }
 0x32b   : > { %948 = shalt.err (!%p945_p9)
}
 0x32c   : > { %831 = dma.vmem_to_hbm [thread:$0]  (%p1156_p10), %s632_s20, 128, %s629_s16, %s618_s18  }
 0x32d PF: > { %p837_p11 = scmp.ge.s32.totalorder %s1031_s10, 2  ;;  %s643_s13 = sand.u32 1, %s995_s24  }
 0x32e   : > { %s644_s19 = scalar_lea.sflag [#allocation5], %s643_s13 }
 0x32f   : > { %p834_p13 = pnand %p837_p11, %p1163_p12 }
 0x331   : > { %p835_p0 = pneg %p834_p13 }
 0x333   : > { %990 = dma.done.wait (%p835_p0), %s644_s19, 128  }
 0x334   : > { %992 = vsyncadd (%p835_p0), %s644_s19, 4294967168  ;;  %s20_s10 = sadd.s32 1, %s1031_s10   ;;  %s1337_s22 = sld [smem:[#allocation7_spill]] }
 0x335   : > { %p17_p1 = scmp.ge.s32.totalorder %s20_s10, 6   ;;  %s1338_s26 = sld [smem:[#allocation14_spill]] }
 0x336   : > { %s1339_s27 = sld [smem:[#allocation8_spill]]  ;;  %s1345_s24 = smov %s999_s25 }
 0x337   : > { %s1340_s28 = sld [smem:[#allocation13_spill]]  ;;  %19 = sbr.rel (!%p17_p1) target bundleno = 8 (0x8), region = 143 }
 0x338   : > { %s1341_s29 = sld [smem:[#allocation9_spill]] }
 0x339   : > { %s1342_s30 = sld [smem:[#allocation10_spill]] }
 0x33a   : > { %s1343_s8 = sld [smem:[#allocation11_spill]]  ;;  %s1346_s25 = smov %s1337_s22 }
 0x33b   : > { %s1344_s9 = sld [smem:[#allocation12_spill]] }
 0x33c   :  { %649 = vsyncpa [#allocation5], 1 }
 0x33d   :  { %651 = vsyncpa [#allocation5 + $0x1], 1 }

</bundles_post_ra>
